<compile_context>
chip_gen: v6e
topology: v6e:2x2x1
jax: 0.10.0
libtpu: 0.0.40
codegen_flags: <defaults>
</compile_context>

<pallas_src>
import functools

import jax
import jax.numpy as jnp
from jax import lax
from jax.experimental import pallas as pl
from jax.experimental.pallas import tpu as pltpu


def _attn_dropout_kernel(scale_ref, p_ref, seed_ref, q_ref, k_ref, o_ref):
    """One batch tile per grid step.

    scale_ref : SMEM f32[1]   (inv_scale_factor; we divide by it)
    p_ref     : SMEM f32[1]   (dropout probability)
    seed_ref  : SMEM i32[1]   (PRNG seed)
    q_ref     : VMEM (Bt, S, D)
    k_ref     : VMEM (Bt, S, D)
    o_ref     : VMEM (Bt, S, D)
    """
    q = q_ref[...].astype(jnp.float32)                    # (Bt, S, D)
    k = k_ref[...].astype(jnp.float32)                    # (Bt, S, D)

    # Fold the scale into K (S*D work instead of S*S).
    inv_scale = 1.0 / scale_ref[0]
    ks = k * inv_scale

    # scores = q @ k^T (batched), contraction over last dims — no explicit transpose.
    s = jnp.einsum("bqd,bkd->bqk", q, ks,
                   preferred_element_type=jnp.float32)    # (Bt, S, S)

    # Numerically stable softmax over the last dim; fold 1/(1-p) into the normalizer.
    m = jnp.max(s, axis=-1, keepdims=True)
    e = jnp.exp(s - m)
    denom = jnp.sum(e, axis=-1, keepdims=True)            # (Bt, S, 1)

    p = p_ref[0]
    norm = (1.0 / (1.0 - p)) / denom                      # (Bt, S, 1) scalar-ish work

    # --- Dropout mask: counter-based hash (portable, grid-order independent) ---
    bt, ss, _ = s.shape
    base = pl.program_id(0) * (bt * ss * ss)              # global element offset of this tile
    lin = (lax.broadcasted_iota(jnp.int32, s.shape, 0) * (ss * ss)
           + lax.broadcasted_iota(jnp.int32, s.shape, 1) * ss
           + lax.broadcasted_iota(jnp.int32, s.shape, 2)
           + base)
    seed_u = seed_ref[0].astype(jnp.uint32)
    h = lin.astype(jnp.uint32) + seed_u * jnp.uint32(0x9E3779B1)
    h = h ^ (h >> 16)
    h = h * jnp.uint32(0x7FEB352D)
    h = h ^ (h >> 15)
    h = h * jnp.uint32(0x846CA68B)
    h = h ^ (h >> 16)

    # Integer-domain threshold: keep iff uniform24 >= p * 2^24  (P(keep) = 1 - p).
    thr = (p * jnp.float32(16777216.0)).astype(jnp.int32).astype(jnp.uint32)
    keep = (h & jnp.uint32(0x00FFFFFF)) >= thr

    probs = jnp.where(keep, e * norm, jnp.float32(0.0))   # softmax * 1/(1-p), dropped -> 0

    # output = dropout(softmax) @ input_tensor1  (original, unscaled q — per the module)
    out = jnp.einsum("bqk,bkd->bqd", probs, q,
                     preferred_element_type=jnp.float32)  # (Bt, S, D)
    o_ref[...] = out.astype(o_ref.dtype)


def _pick_block_batch(B, S, D, budget_bytes=6 * 1024 * 1024):
    """Largest divisor of B whose per-step VMEM footprint fits the budget."""
    # f32 footprint per batch element: double-buffered q/k/out tiles + (S,S) intermediates.
    per_b = 4 * (6 * S * D + 4 * S * S)
    bt = max(1, min(B, budget_bytes // max(per_b, 1)))
    while B % bt:
        bt -= 1
    return bt


@functools.partial(jax.jit, static_argnames=())
def attn_dropout(q, k, inv_scale_factor, dropout_p, seed):
    """q, k: (B, S, D) float32. inv_scale_factor, dropout_p: (1,) f32. seed: (1,) i32."""
    B, S, D = q.shape
    Bt = _pick_block_batch(B, S, D)
    grid = (B // Bt,)
    return pl.pallas_call(
        _attn_dropout_kernel,
        out_shape=jax.ShapeDtypeStruct((B, S, D), q.dtype),
        grid=grid,
        in_specs=[
            pl.BlockSpec(memory_space=pltpu.SMEM),               # inv_scale_factor
            pl.BlockSpec(memory_space=pltpu.SMEM),               # dropout_p
            pl.BlockSpec(memory_space=pltpu.SMEM),               # seed
            pl.BlockSpec((Bt, S, D), lambda b: (b, 0, 0)),       # input_tensor1 (q)
            pl.BlockSpec((Bt, S, D), lambda b: (b, 0, 0)),       # input_tensor2 (k)
        ],
        out_specs=pl.BlockSpec((Bt, S, D), lambda b: (b, 0, 0)),
        compiler_params=pltpu.CompilerParams(
            # Randomness is derived from global element indices, not grid order,
            # so the batch axis is safe to shard across TensorCores (v7x megacore).
            dimension_semantics=("parallel",),
        ),
    )(inv_scale_factor, dropout_p, seed, q, k)


if __name__ == "__main__":
    B, S, D = 2, 8, 32

    key = jax.random.PRNGKey(0)
    k1, k2 = jax.random.split(key)
    input_tensor1 = jax.random.normal(k1, (B, S, D), dtype=jnp.float32)
    input_tensor2 = jax.random.normal(k2, (B, S, D), dtype=jnp.float32)

    inv_scale_factor = jnp.array([jnp.sqrt(jnp.float32(D))], dtype=jnp.float32)
    dropout_p = jnp.array([0.1], dtype=jnp.float32)
    seed = jnp.array([0], dtype=jnp.int32)

    out = attn_dropout(input_tensor1, input_tensor2, inv_scale_factor, dropout_p, seed)
    jax.block_until_ready(out)

    assert out.shape == (B, S, D), out.shape
    assert out.dtype == jnp.float32, out.dtype
    assert bool(jnp.all(jnp.isfinite(out)))
    print("KERNEL_OK")
</pallas_src>

<mosaic_0001>
module attributes {stable_mosaic.version = 11 : i64} {
  func.func @_attn_dropout_kernel(%arg0: i32, %arg1: memref<1xf32, #tpu.memory_space<smem>>, %arg2: memref<1xf32, #tpu.memory_space<smem>>, %arg3: memref<1xi32, #tpu.memory_space<smem>>, %arg4: memref<2x8x32xf32, #tpu.memory_space<vmem>>, %arg5: memref<2x8x32xf32, #tpu.memory_space<vmem>>, %arg6: memref<2x8x32xf32, #tpu.memory_space<vmem>>) attributes {dimension_semantics = [#tpu.dimension_semantics<parallel>], iteration_bounds = array<i64: 1>, scalar_prefetch = 0 : i64, scratch_operands = 0 : i64, tpu.core_type = #tpu.core_type<tc>, window_params = [{transform_indices = @transform_0, window_bounds = array<i64: 1>}, {transform_indices = @transform_1, window_bounds = array<i64: 1>}, {transform_indices = @transform_2, window_bounds = array<i64: 1>}, {transform_indices = @transform_3, window_bounds = array<i64: 2, 8, 32>}, {transform_indices = @transform_4, window_bounds = array<i64: 2, 8, 32>}, {transform_indices = @transform_5, window_bounds = array<i64: 2, 8, 32>}]} {
    %c0 = arith.constant 0 : index
    %c0_0 = arith.constant 0 : index
    %c0_1 = arith.constant 0 : index
    %0 = vector.load %arg4[%c0, %c0_0, %c0_1] : memref<2x8x32xf32, #tpu.memory_space<vmem>>, vector<2x8x32xf32>
    %c0_2 = arith.constant 0 : index
    %c0_3 = arith.constant 0 : index
    %c0_4 = arith.constant 0 : index
    %1 = vector.load %arg5[%c0_2, %c0_3, %c0_4] : memref<2x8x32xf32, #tpu.memory_space<vmem>>, vector<2x8x32xf32>
    %c0_5 = arith.constant 0 : index
    %2 = memref.load %arg1[%c0_5] : memref<1xf32, #tpu.memory_space<smem>>
    %cst = arith.constant 1.000000e+00 : f32
    %3 = arith.divf %cst, %2 : f32
    %4 = vector.broadcast %3 : f32 to vector<2x8x32xf32>
    %5 = arith.mulf %1, %4 : vector<2x8x32xf32>
    "tpu.trace_start"() <{level = 10 : i32, message = "bqd,bkd->bqk"}> : () -> ()
    %cst_6 = arith.constant dense<0.000000e+00> : vector<2x8x8xf32>
    %6 = tpu.matmul %0, %5, %cst_6 {dimension_numbers = #tpu.dot_dimension_numbers<[2], [2], [1], [1], [0, 0, 0, 1, 1, 1], [0], [0]>} : vector<2x8x32xf32>, vector<2x8x32xf32>, vector<2x8x8xf32> -> vector<2x8x8xf32>
    "tpu.trace_stop"() : () -> ()
    %cst_7 = arith.constant dense<0xFF800000> : vector<2x8xf32>
    %7 = vector.multi_reduction <maximumf>, %6, %cst_7 [2] : vector<2x8x8xf32> to vector<2x8xf32>
    %8 = vector.shape_cast %7 : vector<2x8xf32> to vector<2x8x1xf32>
    %9 = vector.broadcast %8 : vector<2x8x1xf32> to vector<2x8x8xf32>
    %10 = arith.subf %6, %9 : vector<2x8x8xf32>
    %11 = math.exp %10 : vector<2x8x8xf32>
    %cst_8 = arith.constant dense<0.000000e+00> : vector<2x8xf32>
    %12 = vector.multi_reduction <add>, %11, %cst_8 [2] : vector<2x8x8xf32> to vector<2x8xf32>
    %13 = vector.shape_cast %12 : vector<2x8xf32> to vector<2x8x1xf32>
    %c0_9 = arith.constant 0 : index
    %14 = memref.load %arg2[%c0_9] : memref<1xf32, #tpu.memory_space<smem>>
    %cst_10 = arith.constant 1.000000e+00 : f32
    %15 = arith.subf %cst_10, %14 : f32
    %cst_11 = arith.constant 1.000000e+00 : f32
    %16 = arith.divf %cst_11, %15 : f32
    %17 = vector.broadcast %16 : f32 to vector<2x8x1xf32>
    %18 = arith.divf %17, %13 : vector<2x8x1xf32>
    %c128_i32 = arith.constant 128 : i32
    %19 = arith.muli %arg0, %c128_i32 : i32
    %20 = tpu.iota {dimensions = array<i32: 0>} : vector<2x8x8xi32>
    %c64_i32 = arith.constant 64 : i32
    %21 = vector.broadcast %c64_i32 : i32 to vector<2x8x8xi32>
    %22 = arith.muli %20, %21 : vector<2x8x8xi32>
    %23 = tpu.iota {dimensions = array<i32: 1>} : vector<2x8x8xi32>
    %c8_i32 = arith.constant 8 : i32
    %24 = vector.broadcast %c8_i32 : i32 to vector<2x8x8xi32>
    %25 = arith.muli %23, %24 : vector<2x8x8xi32>
    %26 = arith.addi %22, %25 : vector<2x8x8xi32>
    %27 = tpu.iota {dimensions = array<i32: 2>} : vector<2x8x8xi32>
    %28 = arith.addi %26, %27 : vector<2x8x8xi32>
    %29 = vector.broadcast %19 : i32 to vector<2x8x8xi32>
    %30 = arith.addi %28, %29 : vector<2x8x8xi32>
    %c0_12 = arith.constant 0 : index
    %31 = memref.load %arg3[%c0_12] : memref<1xi32, #tpu.memory_space<smem>>
    %c-1640531535_i32 = arith.constant -1640531535 : i32
    %32 = arith.muli %31, %c-1640531535_i32 : i32
    %33 = vector.broadcast %32 : i32 to vector<2x8x8xi32>
    %34 = arith.addi %30, %33 : vector<2x8x8xi32>
    %c16_i32 = arith.constant 16 : i32
    %35 = vector.broadcast %c16_i32 : i32 to vector<2x8x8xi32>
    %36 = arith.shrui %34, %35 : vector<2x8x8xi32>
    %37 = arith.xori %34, %36 : vector<2x8x8xi32>
    %c2146121005_i32 = arith.constant 2146121005 : i32
    %38 = vector.broadcast %c2146121005_i32 : i32 to vector<2x8x8xi32>
    %39 = arith.muli %37, %38 : vector<2x8x8xi32>
    %c15_i32 = arith.constant 15 : i32
    %40 = vector.broadcast %c15_i32 : i32 to vector<2x8x8xi32>
    %41 = arith.shrui %39, %40 : vector<2x8x8xi32>
    %42 = arith.xori %39, %41 : vector<2x8x8xi32>
    %c-2073254261_i32 = arith.constant -2073254261 : i32
    %43 = vector.broadcast %c-2073254261_i32 : i32 to vector<2x8x8xi32>
    %44 = arith.muli %42, %43 : vector<2x8x8xi32>
    %c16_i32_13 = arith.constant 16 : i32
    %45 = vector.broadcast %c16_i32_13 : i32 to vector<2x8x8xi32>
    %46 = arith.shrui %44, %45 : vector<2x8x8xi32>
    %47 = arith.xori %44, %46 : vector<2x8x8xi32>
    %cst_14 = arith.constant 0x4B800000 : f32
    %48 = arith.mulf %14, %cst_14 : f32
    %49 = arith.fptosi %48 : f32 to i32
    %c16777215_i32 = arith.constant 16777215 : i32
    %50 = vector.broadcast %c16777215_i32 : i32 to vector<2x8x8xi32>
    %51 = arith.andi %47, %50 : vector<2x8x8xi32>
    %52 = vector.broadcast %49 : i32 to vector<2x8x8xi32>
    %53 = arith.cmpi uge, %51, %52 : vector<2x8x8xi32>
    %54 = vector.broadcast %18 : vector<2x8x1xf32> to vector<2x8x8xf32>
    %55 = arith.mulf %11, %54 : vector<2x8x8xf32>
    %cst_15 = arith.constant 0.000000e+00 : f32
    %56 = vector.broadcast %cst_15 : f32 to vector<2x8x8xf32>
    %57 = arith.select %53, %55, %56 : vector<2x8x8xi1>, vector<2x8x8xf32>
    "tpu.trace_start"() <{level = 10 : i32, message = "bqk,bkd->bqd"}> : () -> ()
    %cst_16 = arith.constant dense<0.000000e+00> : vector<2x8x32xf32>
    %58 = tpu.matmul %57, %0, %cst_16 {dimension_numbers = #tpu.dot_dimension_numbers<[2], [1], [1], [2], [0, 0, 0, 1, 1, 2], [0], [0]>} : vector<2x8x8xf32>, vector<2x8x32xf32>, vector<2x8x32xf32> -> vector<2x8x32xf32>
    "tpu.trace_stop"() : () -> ()
    %c0_17 = arith.constant 0 : index
    %c0_18 = arith.constant 0 : index
    %c0_19 = arith.constant 0 : index
    %59 = vector.load %arg6[%c0_17, %c0_18, %c0_19] : memref<2x8x32xf32, #tpu.memory_space<vmem>>, vector<2x8x32xf32>
    tpu.vector_store %arg6[%c0_17, %c0_18, %c0_19], %58 {strides = array<i32>} : memref<2x8x32xf32, #tpu.memory_space<vmem>>, vector<2x8x32xf32>,
    return
  }
  func.func @transform_0(%arg0: i32) -> i32 {
    %c0_i32 = arith.constant 0 : i32
    %c0_i32_0 = arith.constant 0 : i32
    return %c0_i32 : i32
  }
  func.func @transform_1(%arg0: i32) -> i32 {
    %c0_i32 = arith.constant 0 : i32
    %c0_i32_0 = arith.constant 0 : i32
    return %c0_i32 : i32
  }
  func.func @transform_2(%arg0: i32) -> i32 {
    %c0_i32 = arith.constant 0 : i32
    %c0_i32_0 = arith.constant 0 : i32
    return %c0_i32 : i32
  }
  func.func @transform_3(%arg0: i32) -> (i32, i32, i32) {
    %c0_i32 = arith.constant 0 : i32
    %c0_i32_0 = arith.constant 0 : i32
    %c0_i32_1 = arith.constant 0 : i32
    return %arg0, %c0_i32, %c0_i32_0 : i32, i32, i32
  }
  func.func @transform_4(%arg0: i32) -> (i32, i32, i32) {
    %c0_i32 = arith.constant 0 : i32
    %c0_i32_0 = arith.constant 0 : i32
    %c0_i32_1 = arith.constant 0 : i32
    return %arg0, %c0_i32, %c0_i32_0 : i32, i32, i32
  }
  func.func @transform_5(%arg0: i32) -> (i32, i32, i32) {
    %c0_i32 = arith.constant 0 : i32
    %c0_i32_0 = arith.constant 0 : i32
    %c0_i32_1 = arith.constant 0 : i32
    return %arg0, %c0_i32, %c0_i32_0 : i32, i32, i32
  }
}

</mosaic_0001>

<bundles_post_ra>
// kernel: attn_dropout.1
= control target key start
LH: loop header
LB: loop body
LE: loop exit
PB: predicated region body
PF: predicated region fallthrough
CT: control target
= control target key end

     0   :  { %13 = vsyncpa [#allocation6], 0  ;;  %s666_s0 = inlined_call_operand.<no memory space> [shape: f32[1], index: 0, kind: input, shape index: {}]   ;;  %s667_s1 = inlined_call_operand.<no memory space> [shape: f32[1], index: 1, kind: input, shape index: {}]   ;;  %s668_s2 = inlined_call_operand.<no memory space> [shape: s32[1], index: 2, kind: input, shape index: {}]   ;;  %s669_s3 = inlined_call_operand.hbm [shape: f32[2,8,32], index: 3, kind: input, shape index: {}]   ;;  %s670_s4 = inlined_call_operand.hbm [shape: f32[2,8,32], index: 4, kind: input, shape index: {}]   ;;  %s671_s5 = inlined_call_operand.hbm [shape: f32[2,8,32], index: 5, kind: output, shape index: {}]  }
   0x1   :  { %14 = vsyncpa [#allocation9], 0 }
   0x2   :  { %15 = vsyncpa [#allocation7], 0  ;;  %s583_s18 = smov [#allocation5]  }
   0x3   :  { %s27_s19 = sshll.u32 %s583_s18, 4  ;;  %s28_s19 = int_to_ptr.vmem [resolvable:$true] %s27_s19 }
   0x4   :  { %s525_s20 = scalar_lea.vmem %s28_s19, 256  ;;  %p530_p1 = scmp.lt.s32.totalorder %s28_s19, %s28_s19 }
   0x5   :  { %p526_p0 = scmp.ne.s32.totalorder %s28_s19, %s525_s20  ;;  %p531_p2 = scmp.lt.s32.totalorder %s525_s20, %s525_s20 }
   0x7   :  { %p532_p3 = por %p531_p2, %p530_p1 }
   0x9   :  { %p533_p4 = pnand %p532_p3, %p526_p0 }
   0xb   :  { %536 = shalt.err (!%p533_p4)
}
   0xc   :  { %s584_s21 = smov 128   ;;  %s585_s22 = smov 8  }
   0xd   :  { %33 = dma.hbm_to_vmem [thread:$0]  %s669_s3, 256, %s28_s19, [#allocation6], %s584_s21, %s584_s21, %s585_s22  }
   0xe   :  { %s586_s25 = smov [#allocation8]  }
   0xf   :  { %s39_s26 = sshll.u32 %s586_s25, 4  ;;  %s40_s26 = int_to_ptr.vmem [resolvable:$true] %s39_s26 }
  0x10   :  { %s545_s27 = scalar_lea.vmem %s40_s26, 256  ;;  %p550_p6 = scmp.lt.s32.totalorder %s40_s26, %s40_s26 }
  0x11   :  { %p546_p5 = scmp.ne.s32.totalorder %s40_s26, %s545_s27  ;;  %p551_p7 = scmp.lt.s32.totalorder %s545_s27, %s545_s27 }
  0x13   :  { %p552_p8 = por %p551_p7, %p550_p6 }
  0x15   :  { %p553_p9 = pnand %p552_p8, %p546_p5 }
  0x17   :  { %556 = shalt.err (!%p553_p9)
}
  0x18   :  { %45 = dma.hbm_to_vmem [thread:$0]  %s670_s4, 256, %s40_s26, [#allocation9], %s584_s21, %s584_s21, %s585_s22  }
  0x19   :  { %577 = dma.done.wait [#allocation6], 256  }
  0x1a   :  { %578 = vsyncadd [#allocation6], 4294967040  ;;  %v57_v0 = vstv %s666_s0 }
  0x1b   :  { %579 = dma.done.wait [#allocation9], 256  }
  0x1c   :  { %580 = vsyncadd [#allocation9], 4294967040  ;;  %505 = vrcp.f32 %v57_v0  ;;  %v587_v1 = vmov 0.0   ;;  %vm588_vm0 = vmmov 0   ;;  %v54_v3 = vld [vmem:[#allocation8] sm:$0xff]  ;;  %v55_v4 = vld [vmem:[#allocation8 + $0x8] sm:$0xff]  ;;  %v246_v28 = vlaneseq }
  0x1d   :  { %469 = vmatprep.subr.mxu0 %v587_v1  ;;  %474 = vmatprep.subr.mxu1 %v587_v1  ;;  %vm63_vm1 = vcmask 261120   ;;  %v52_v8 = vld [vmem:[#allocation5] sm:$0xff]  ;;  %v53_v9 = vld [vmem:[#allocation5 + $0x8] sm:$0xff]  ;;  %vm216_vm2 = vcmask 64512   ;;  %s236_s7 = ssub.f32 1.0, %s667_s1  ;;  %s278_s13 = smul.f32 16777216.0, %s667_s1 }
  0x1e   :  { %471 = vmatprep.mubr.msk.f32.mxu0 %vm588_vm0, %v587_v1  ;;  %476 = vmatprep.mubr.msk.f32.mxu1 %vm588_vm0, %v587_v1  ;;  %v247_v29 = vshrl.u32 %v246_v28, 7  ;;  %v251_v31 = vand.u32 127, %v246_v28  ;;  %s258_s10 = smul.u32 2654435761, %s668_s2  ;;  %s589_s1 = smov [#allocation10]  }
  0x1f   :  { %v237_v16 = vstv %s236_s7  ;;  %p493_p10 = scmp.lt.s32.totalorder %s278_s13, 0  ;;  %s494_s2 = sceil.f32 %s278_s13 }
  0x20   :  { %507 = vrcp.f32 %v237_v16  ;;  %v248_v30 = vmul.u32 8, %v247_v29  ;;  %v259_v34 = vstv %s258_s10  ;;  %s495_s14 = sfloor.f32 %s278_s13  ;;  %s442_s17 = sshll.u32 %s589_s1, 4  ;;  %s443_s17 = int_to_ptr.vmem [resolvable:$true] %s442_s17 }
  0x21   :  { %s673_s2 = smov (!%p493_p10, %s494_s2), %s495_s14  ;;  %s557_s18 = scalar_lea.vmem %s443_s17, 256 }
  0x22   :  { %v249_v32 = vadd.s32 64, %v248_v30  ;;  %v252_v33 = vadd.s32 %v251_v31, %v248_v30  ;;  %s497_s16 = scvt.f32.s32 %s673_s2  ;;  %p558_p11 = scmp.ne.s32.totalorder %s443_s17, %s557_s18 }
  0x23   :  { %p562_p12 = scmp.lt.s32.totalorder %s443_s17, %s443_s17  ;;  %p563_p13 = scmp.lt.s32.totalorder %s557_s18, %s557_s18 }
  0x24   :  { %v253_v35 = vadd.s32 %v251_v31, %v249_v32  ;;  %v260_v36 = vadd.s32 %v259_v34, %v252_v33  ;;  %v282_v58 = vstv %s497_s16 }
  0x25   :  { %p564_p0 = por %p563_p13, %p562_p12 }
  0x26   :  { %v261_v37 = vadd.s32 %v259_v34, %v253_v35  ;;  %v262_v38 = vshrl.u32 %v260_v36, 16 }
  0x27   :  { %p565_p1 = pnand %p564_p0, %p558_p11 }
  0x28   :  { %v263_v39 = vshrl.u32 %v261_v37, 16  ;;  %v264_v40 = vxor.u32 %v262_v38, %v260_v36 }
  0x29   :  { %v506_v2 = vpop.eup %505 }
  0x2a   :  { %489 = vpush %v506_v2  ;;  %v265_v41 = vxor.u32 %v263_v39, %v261_v37  ;;  %v266_v42 = vmul.u32 2146121005, %v264_v40 }
  0x2c   :  { %v267_v43 = vmul.u32 2146121005, %v265_v41  ;;  %v268_v44 = vshrl.u32 %v266_v42, 15 }
  0x2d   :  { %v508_v17 = vpop.eup %507 }
  0x2e   :  { %491 = vpush %v508_v17  ;;  %v269_v45 = vshrl.u32 %v267_v43, 15  ;;  %v270_v46 = vxor.u32 %v268_v44, %v266_v42 }
  0x30   :  { %v271_v48 = vxor.u32 %v269_v45, %v267_v43  ;;  %v272_v49 = vmul.u32 2221713035, %v270_v46 }
  0x32   :  { %v273_v51 = vmul.u32 2221713035, %v271_v48  ;;  %v274_v52 = vshrl.u32 %v272_v49, 16 }
  0x34   :  { %v275_v53 = vshrl.u32 %v273_v51, 16  ;;  %v276_v54 = vxor.u32 %v274_v52, %v272_v49 }
  0x36   :  { %v277_v56 = vxor.u32 %v275_v53, %v273_v51  ;;  %v280_v57 = vand.u32 16777215, %v276_v54 }
  0x38   :  { %v281_v61 = vand.u32 16777215, %v277_v56  ;;  %vm283_vm3 = vcmp.ge.u32.totalorder %v280_v57, %v282_v58 }
  0x3a   :  { %vm284_vm4 = vcmp.ge.u32.totalorder %v281_v61, %v282_v58 }
  0x5b   :  { %s490_s4 = spop %489 }
  0x5c   :  { %v60_v5 = vstv %s490_s4 }
  0x5d   :  { %v61_v6 = vmul.f32 %v60_v5, %v54_v3  ;;  %v62_v7 = vmul.f32 %v60_v5, %v55_v4 }
  0x5f   :  { %470 = vmatpush3.xpose.msk.msra.mxu0 %vm63_vm1, %v61_v6  ;;  %475 = vmatpush3.xpose.msk.msra.mxu1 %vm63_vm1, %v62_v7  ;;  %s492_s15 = spop %491 }
  0x60   :  { %479 = vmatprep.subr.mxu0 %v587_v1  ;;  %484 = vmatprep.subr.mxu1 %v587_v1  ;;  %v240_v55 = vstv %s492_s15 }
  0x62   :  { %472 = vmatmul.mubr.msk.f32.vlgmr.msra.gmra.mxu0 %vm63_vm1, %v52_v8  ;;  %477 = vmatmul.mubr.msk.f32.vlgmr.msra.gmra.mxu1 %vm63_vm1, %v53_v9 }
  0x63   :  { %480 = vmatpush3.msra.mxu0 %v52_v8  ;;  %481 = vmatprep.mubr.msk.f32.mxu0 %vm588_vm0, %v587_v1 }
  0x64   :  { %485 = vmatpush3.msra.mxu1 %v53_v9  ;;  %486 = vmatprep.mubr.msk.f32.mxu1 %vm588_vm0, %v587_v1 }
 0x122   :  { %v136_v10 = vpop.f32.mrf.mxu0  ;;  %v212_v11 = vpop.f32.mrf.mxu1 }
 0x123   :  { %v217_v12 = vsel %vm216_vm2, %v136_v10, -inf  ;;  %v220_v15 = vsel %vm216_vm2, %v212_v11, -inf }
 0x124   :  { %218 = vmax.xlane.f32.xlu0 %v217_v12  ;;  %v473_v13 = vpop.f32.mrf.mxu0  ;;  %v478_v14 = vpop.f32.mrf.mxu1 }
 0x128   :  { %221 = vmax.xlane.f32.xlu0 %v220_v15 }
 0x1ad   :  { %v219_v18 = vpop.xlane.xlu0 %218 }
 0x1ae   :  { %v223_v19 = vsub.f32 %v136_v10, %v219_v18 }
 0x1b0   :  { %v225_v20 = vmul.f32 1.442695, %v223_v19 }
 0x1b1   :  { %v222_v21 = vpop.xlane.xlu0 %221 }
 0x1b2   :  { %509 = vpow2.f32 %v225_v20  ;;  %v224_v22 = vsub.f32 %v212_v11, %v222_v21 }
 0x1b4   :  { %v227_v23 = vmul.f32 1.442695, %v224_v22 }
 0x1b6   :  { %511 = vpow2.f32 %v227_v23 }
 0x1bf   :  { %v510_v24 = vpop.eup %509 }
 0x1c0   :  { %v229_v25 = vsel %vm216_vm2, %v510_v24, 0.0 }
 0x1c1   :  { %230 = vadd.xlane.f32.xlu1 %v229_v25 }
 0x1c3   :  { %v512_v26 = vpop.eup %511 }
 0x1c4   :  { %v232_v27 = vsel %vm216_vm2, %v512_v26, 0.0 }
 0x1c5   :  { %233 = vadd.xlane.f32.xlu1 %v232_v27 }
 0x24a   :  { %v231_v47 = vpop.xlane.xlu1 %230 }
 0x24b   :  { %513 = vrcp.f32 %v231_v47 }
 0x24e   :  { %v234_v50 = vpop.xlane.xlu1 %233 }
 0x24f   :  { %515 = vrcp.f32 %v234_v50 }
 0x258   :  { %v514_v59 = vpop.eup %513 }
 0x259   :  { %v242_v60 = vmul.f32 %v514_v59, %v240_v55 }
 0x25b   :  { %v285_v62 = vmul.f32 %v510_v24, %v242_v60 }
 0x25c   :  { %v516_v63 = vpop.eup %515 }
 0x25d   :  { %v244_v0 = vmul.f32 %v516_v63, %v240_v55  ;;  %v287_v1 = vsel %vm283_vm3, %v285_v62, 0.0 }
 0x25e   :  { %482 = vmatmul.mubr.msk.f32.vlgmr.msra.gmra.mxu0 %vm216_vm2, %v287_v1 }
 0x25f   :  { %v286_v2 = vmul.f32 %v512_v26, %v244_v0 }
 0x261   :  { %v288_v3 = vsel %vm284_vm4, %v286_v2, 0.0 }
 0x262   :  { %487 = vmatmul.mubr.msk.f32.vlgmr.msra.gmra.mxu1 %vm216_vm2, %v288_v3 }
 0x31e   :  { %v358_v4 = vpop.f32.mrf.mxu0 }
 0x31f   :  { %435 = vst.msk [vmem:[#allocation10] sm:$0xff] %vm63_vm1, %v358_v4 }
 0x320   :  { %v483_v5 = vpop.f32.mrf.mxu0 }
 0x322   :  { %v431_v6 = vpop.f32.mrf.mxu1 }
 0x323   :  { %436 = vst.msk [vmem:[#allocation10 + $0x8] sm:$0xff] %vm63_vm1, %v431_v6 }
 0x324   :  { %v488_v7 = vpop.f32.mrf.mxu1 }
 0x325   :  { %568 = shalt.err (!%p565_p1)
}
 0x326   :  { %448 = dma.vmem_to_hbm [thread:$0]  %s443_s17, 256, %s671_s5, [#allocation7], %s584_s21, %s584_s21, %s585_s22  }
 0x327   :  { %581 = dma.done.wait [#allocation7], 256  }
 0x328   :  { %582 = vsyncadd [#allocation7], 4294967040 }
 0x329   :  { %452 = vsyncpa [#allocation6], 1 }
 0x32a   :  { %453 = vsyncpa [#allocation9], 1 }
 0x32b   :  { %454 = vsyncpa [#allocation7], 1 }

</bundles_post_ra>
